<compile_context>
chip_gen: v7x
topology: tpu7x:2x2x1
jax: 0.10.0
libtpu: 0.0.40
codegen_flags: <defaults>
</compile_context>

<pallas_src>
import functools

import jax
import jax.numpy as jnp
from jax.experimental import pallas as pl
from jax.experimental.pallas import tpu as pltpu


def _round_up(x, m):
    return (x + m - 1) // m * m


def _vmem_limit_bytes():
    """Per-core VMEM budget. Conservative fallback = 64 MiB (v7x per-TC)."""
    cap = 64 * 1024 * 1024
    try:
        info = pltpu.get_tpu_info()
        cap = int(getattr(info, "vmem_capacity_bytes", cap) or cap)
    except Exception:
        pass
    return min(max(cap * 3 // 4, 32 * 1024 * 1024), 128 * 1024 * 1024)


# --------------------- fully fused fast path (everything VMEM-resident) --------------------- #
def fused_encoder_kernel(x_ref, w1_ref, gamma_ref, beta_ref, w2_ref, b2_ref, o_ref,
                         *, inv_n, eps):
    # fc1 without bias: train-mode BatchNorm subtracts the batch mean, cancelling any
    # per-feature constant, so adding b1 would be dead work.
    h = jnp.dot(x_ref[...], w1_ref[...], preferred_element_type=jnp.float32)
    # One-pass batch statistics (f32), biased variance (train-mode BN), clamped >= 0.
    mean = jnp.sum(h, axis=0, keepdims=True) * inv_n
    var = jnp.maximum(jnp.sum(h * h, axis=0, keepdims=True) * inv_n - mean * mean, 0.0)
    scale = gamma_ref[...] * jax.lax.rsqrt(var + eps)
    shift = beta_ref[...] - mean * scale
    a = jnp.maximum(h * scale + shift, 0.0)                       # BN + ReLU
    out = jnp.dot(a.astype(w2_ref.dtype), w2_ref[...],
                  preferred_element_type=jnp.float32) + b2_ref[...]
    o_ref[...] = jax.nn.sigmoid(out)


# ------------------ pass 1 (tiled path): fc1 + batch stats -> folded scale/shift ------------ #
def fc1_stats_kernel(x_ref, w1_ref, gamma_ref, beta_ref, scale_ref, shift_ref,
                     sum_acc, sq_acc, *, inv_n, eps):
    i = pl.program_id(0)

    @pl.when(i == 0)
    def _init():
        sum_acc[...] = jnp.zeros_like(sum_acc)
        sq_acc[...] = jnp.zeros_like(sq_acc)

    # h is NOT written to HBM (no B x E round trip); it is recomputed in pass 2.
    h = jnp.dot(x_ref[...], w1_ref[...], preferred_element_type=jnp.float32)
    sum_acc[...] += jnp.sum(h, axis=0, keepdims=True)
    sq_acc[...] += jnp.sum(h * h, axis=0, keepdims=True)

    @pl.when(i == pl.num_programs(0) - 1)
    def _finalize():
        mean = sum_acc[...] * inv_n
        var = jnp.maximum(sq_acc[...] * inv_n - mean * mean, 0.0)
        scale = gamma_ref[...] * jax.lax.rsqrt(var + eps)
        scale_ref[...] = scale
        shift_ref[...] = beta_ref[...] - mean * scale


# --------- pass 2 (tiled path): recompute fc1, BN(scale/shift) + ReLU, fc2 + sigmoid -------- #
def bn_relu_fc2_kernel(x_ref, w1_ref, scale_ref, shift_ref, w2_ref, b2_ref, o_ref,
                       a_scratch):
    # h recomputed once per batch tile (j == 0), cached in VMEM for all w2 column tiles.
    @pl.when(pl.program_id(1) == 0)
    def _recompute_h():
        h = jnp.dot(x_ref[...], w1_ref[...], preferred_element_type=jnp.float32)
        a = jnp.maximum(h * scale_ref[...] + shift_ref[...], 0.0)
        a_scratch[...] = a.astype(a_scratch.dtype)

    out = jnp.dot(a_scratch[...], w2_ref[...],
                  preferred_element_type=jnp.float32) + b2_ref[...]
    o_ref[...] = jax.nn.sigmoid(out)


# ----------------------- one-time parameter preprocessing (hoisted) ------------------------- #
def prepare_params(w1, b1, gamma, beta, w2, b2, *, use_bf16_matmul=False):
    """Pad / transpose / (optionally bf16-cast) the weights ONCE, outside the per-call path.
    b1 is dropped: train-mode BatchNorm cancels any per-feature constant exactly.
    NOTE: this (and the whole kernel) is only valid for train-mode / batch-statistics BN."""
    del b1
    E, D = w1.shape
    H = w2.shape[0]
    D_pad, E_pad, H_pad = (_round_up(v, 128) for v in (D, E, H))
    mm_dtype = jnp.bfloat16 if use_bf16_matmul else jnp.float32
    f32 = jnp.float32
    return dict(
        w1=jnp.zeros((D_pad, E_pad), mm_dtype).at[:D, :E].set(w1.T.astype(mm_dtype)),
        w2=jnp.zeros((E_pad, H_pad), mm_dtype).at[:E, :H].set(w2.T.astype(mm_dtype)),
        gamma=jnp.zeros((1, E_pad), f32).at[0, :E].set(gamma.astype(f32)),
        beta=jnp.zeros((1, E_pad), f32).at[0, :E].set(beta.astype(f32)),
        b2=jnp.zeros((1, H_pad), f32).at[0, :H].set(b2.astype(f32)),
        D=D, E=E, H=H, D_pad=D_pad, E_pad=E_pad, H_pad=H_pad, mm_dtype=mm_dtype,
    )


# ----------------------------------------- wrapper ------------------------------------------ #
def encoder_forward(labels, prep, *, batch_tile=None, h_tile=None, eps=1e-5,
                    force_tiled=False):
    """Forward pass of Encoder using prepared params. labels: [B, D] float."""
    B, D = labels.shape
    assert D == prep["D"], "label feature dim mismatch"
    D_pad, E_pad, H_pad, H = prep["D_pad"], prep["E_pad"], prep["H_pad"], prep["H"]
    mm_dtype = prep["mm_dtype"]
    mm_bytes = jnp.dtype(mm_dtype).itemsize
    f32 = jnp.float32

    vmem_limit = _vmem_limit_bytes()
    inv_n = 1.0 / float(B)   # statistics use the REAL batch size; padded rows are all-zero

    # ---- batch tiling (sublane-aligned; 16-row alignment for bf16 operands) ----
    row_align = 16 if mm_dtype == jnp.bfloat16 else 8
    if batch_tile is None:
        batch_tile = 512 if B >= 512 else _round_up(B, row_align)
    batch_tile = max(_round_up(batch_tile, row_align), row_align)
    B_pad = _round_up(B, batch_tile)
    nb = B_pad // batch_tile

    # ---- w2 column tiling (lane-dense, largest multiple of 128 dividing H_pad, <= cap) ----
    cap = min(H_pad, 512 if h_tile is None else max(128, _round_up(h_tile, 128)))
    h_tile_sel = 128
    for cand in range(128, cap + 1, 128):
        if H_pad % cand == 0:
            h_tile_sel = cand
    h_tile = h_tile_sel
    nh = H_pad // h_tile

    # Per-call activation padding only (weights were prepared once).
    x_p = jnp.zeros((B_pad, D_pad), mm_dtype).at[:B, :D].set(labels.astype(mm_dtype))

    # ---- small-shape fast path: fully fused single kernel, everything VMEM-resident ----
    fused_io = ((B_pad * D_pad + D_pad * E_pad + E_pad * H_pad) * mm_bytes
                + (B_pad * H_pad + 4 * E_pad + H_pad) * 4)
    fused_tmp = 2 * B_pad * E_pad * 4                     # h and BN+ReLU activation (f32)
    use_fused = (not force_tiled) and (2 * fused_io + fused_tmp <= int(vmem_limit * 0.6))

    if use_fused:
        out_p = pl.pallas_call(
            functools.partial(fused_encoder_kernel, inv_n=inv_n, eps=eps),
            out_shape=jax.ShapeDtypeStruct((B_pad, H_pad), f32),
            grid_spec=pltpu.PrefetchScalarGridSpec(
                num_scalar_prefetch=0,
                grid=(1,),
                in_specs=[
                    pl.BlockSpec((B_pad, D_pad), lambda i: (0, 0)),
                    pl.BlockSpec((D_pad, E_pad), lambda i: (0, 0)),
                    pl.BlockSpec((1, E_pad), lambda i: (0, 0)),
                    pl.BlockSpec((1, E_pad), lambda i: (0, 0)),
                    pl.BlockSpec((E_pad, H_pad), lambda i: (0, 0)),
                    pl.BlockSpec((1, H_pad), lambda i: (0, 0)),
                ],
                out_specs=pl.BlockSpec((B_pad, H_pad), lambda i: (0, 0)),
            ),
            compiler_params=pltpu.CompilerParams(
                dimension_semantics=("arbitrary",),
                vmem_limit_bytes=vmem_limit),
            cost_estimate=pl.CostEstimate(
                flops=int(2 * B_pad * D_pad * E_pad + 2 * B_pad * E_pad * H_pad
                          + 8 * B_pad * E_pad),
                transcendentals=int(E_pad + B_pad * H_pad),
                bytes_accessed=int(mm_bytes * (B_pad * D_pad + D_pad * E_pad
                                               + E_pad * H_pad)
                                   + 4 * (B_pad * H_pad + 4 * E_pad + H_pad)),
            ),
        )(x_p, prep["w1"], prep["gamma"], prep["beta"], prep["w2"], prep["b2"])
        return out_p[:B, :H]

    # ---- pass 1: fc1 + batch stats, emit folded scale/shift only (no h to HBM) ----
    # TODO(synk): v7x-only 2x - split this reduction across the two TensorCores.
    scale, shift = pl.pallas_call(
        functools.partial(fc1_stats_kernel, inv_n=inv_n, eps=eps),
        out_shape=(
            jax.ShapeDtypeStruct((1, E_pad), f32),
            jax.ShapeDtypeStruct((1, E_pad), f32),
        ),
        grid_spec=pltpu.PrefetchScalarGridSpec(
            num_scalar_prefetch=0,
            grid=(nb,),
            in_specs=[
                pl.BlockSpec((batch_tile, D_pad), lambda i: (i, 0)),
                pl.BlockSpec((D_pad, E_pad), lambda i: (0, 0)),
                pl.BlockSpec((1, E_pad), lambda i: (0, 0)),
                pl.BlockSpec((1, E_pad), lambda i: (0, 0)),
            ],
            out_specs=[
                pl.BlockSpec((1, E_pad), lambda i: (0, 0)),
                pl.BlockSpec((1, E_pad), lambda i: (0, 0)),
            ],
            scratch_shapes=[pltpu.VMEM((1, E_pad), f32),   # sum accumulator
                            pltpu.VMEM((1, E_pad), f32)],  # sum-of-squares accumulator
        ),
        compiler_params=pltpu.CompilerParams(
            dimension_semantics=("arbitrary",),
            vmem_limit_bytes=vmem_limit),
        cost_estimate=pl.CostEstimate(
            flops=int(2 * B_pad * D_pad * E_pad + 4 * B_pad * E_pad),
            transcendentals=int(E_pad),
            bytes_accessed=int(mm_bytes * (B_pad * D_pad + D_pad * E_pad) + 16 * E_pad),
        ),
    )(x_p, prep["w1"], prep["gamma"], prep["beta"])

    # ---- pass 2: recompute fc1 per batch tile, BN + ReLU, fc2 (w2 column-tiled) + sigmoid ----
    out_p = pl.pallas_call(
        bn_relu_fc2_kernel,
        out_shape=jax.ShapeDtypeStruct((B_pad, H_pad), f32),
        grid_spec=pltpu.PrefetchScalarGridSpec(
            num_scalar_prefetch=0,
            grid=(nb, nh),
            in_specs=[
                pl.BlockSpec((batch_tile, D_pad), lambda i, j: (i, 0)),
                pl.BlockSpec((D_pad, E_pad), lambda i, j: (0, 0)),
                pl.BlockSpec((1, E_pad), lambda i, j: (0, 0)),     # scale
                pl.BlockSpec((1, E_pad), lambda i, j: (0, 0)),     # shift
                pl.BlockSpec((E_pad, h_tile), lambda i, j: (0, j)),
                pl.BlockSpec((1, h_tile), lambda i, j: (0, j)),
            ],
            out_specs=pl.BlockSpec((batch_tile, h_tile), lambda i, j: (i, j)),
            scratch_shapes=[pltpu.VMEM((batch_tile, E_pad), mm_dtype)],  # cached activation
        ),
        compiler_params=pltpu.CompilerParams(
            dimension_semantics=("parallel", "arbitrary"),
            vmem_limit_bytes=vmem_limit),
        cost_estimate=pl.CostEstimate(
            flops=int(2 * B_pad * D_pad * E_pad + 2 * B_pad * E_pad * H_pad
                      + 4 * B_pad * E_pad + B_pad * H_pad),
            transcendentals=int(B_pad * H_pad),
            bytes_accessed=int(mm_bytes * (B_pad * D_pad + D_pad * E_pad
                                           + nb * E_pad * H_pad)
                               + 4 * (B_pad * H_pad + 4 * E_pad + H_pad)),
        ),
    )(x_p, prep["w1"], scale, shift, prep["w2"], prep["b2"])

    return out_p[:B, :H]


# ----------------------------- parameter init (PyTorch-faithful) ---------------------------- #
def make_params(key, output_size, encoder_layer_size, hidden_layer_size):
    k1, k2, kb1, kb2 = jax.random.split(key, 4)
    # kaiming_normal_(mode='fan_in') on weight [out, in]: std = sqrt(2 / fan_in)
    w1 = jax.random.normal(k1, (encoder_layer_size, output_size), jnp.float32) \
        * jnp.sqrt(2.0 / output_size)
    w2 = jax.random.normal(k2, (hidden_layer_size, encoder_layer_size), jnp.float32) \
        * jnp.sqrt(2.0 / encoder_layer_size)
    # nn.Linear default bias init: U(-1/sqrt(fan_in), 1/sqrt(fan_in))
    b1 = jax.random.uniform(kb1, (encoder_layer_size,), jnp.float32,
                            -1.0 / jnp.sqrt(output_size), 1.0 / jnp.sqrt(output_size))
    b2 = jax.random.uniform(kb2, (hidden_layer_size,), jnp.float32,
                            -1.0 / jnp.sqrt(encoder_layer_size),
                            1.0 / jnp.sqrt(encoder_layer_size))
    gamma = jnp.ones((encoder_layer_size,), jnp.float32)   # BatchNorm1d affine
    beta = jnp.zeros((encoder_layer_size,), jnp.float32)
    return w1, b1, gamma, beta, w2, b2


# ----------------------------------- pure-JAX reference ------------------------------------- #
def reference_forward(labels, w1, b1, gamma, beta, w2, b2):
    h = labels @ w1.T + b1
    mean = jnp.mean(h, axis=0)
    var = jnp.mean((h - mean) ** 2, axis=0)          # biased, train-mode BN
    h = (h - mean) / jnp.sqrt(var + 1e-5) * gamma + beta
    h = jnp.maximum(h, 0.0)
    return jax.nn.sigmoid(h @ w2.T + b2)


if __name__ == "__main__":
    key = jax.random.PRNGKey(0)

    # -- config 1: module-consistent small shapes -> fused single-kernel fast path --
    output_size, encoder_layer_size, hidden_layer_size, batch = 16, 32, 32, 8
    kx, kp, key = jax.random.split(key, 3)
    labels = jax.random.normal(kx, (batch, output_size), jnp.float32)
    params = make_params(kp, output_size, encoder_layer_size, hidden_layer_size)
    prep = prepare_params(*params)                       # one-time weight preprocessing
    out = jax.block_until_ready(encoder_forward(labels, prep))
    ref = reference_forward(labels, *params)
    assert out.shape == (batch, hidden_layer_size)
    assert jnp.allclose(out, ref, atol=2e-5, rtol=1e-5), "fused path mismatch vs reference"

    # -- config 2: exercise the tiled two-pass path (nb > 1 batch tiles, nh > 1 w2 tiles) --
    out_size2, enc_size2, hid_size2, batch2 = 16, 48, 160, 32
    kx2, kp2 = jax.random.split(key)
    labels2 = jax.random.normal(kx2, (batch2, out_size2), jnp.float32)
    params2 = make_params(kp2, out_size2, enc_size2, hid_size2)
    prep2 = prepare_params(*params2)
    out2 = jax.block_until_ready(
        encoder_forward(labels2, prep2, batch_tile=8, h_tile=128, force_tiled=True))
    ref2 = reference_forward(labels2, *params2)
    assert out2.shape == (batch2, hid_size2)
    assert jnp.allclose(out2, ref2, atol=2e-5, rtol=1e-5), "tiled path mismatch vs reference"

    print("KERNEL_OK")
</pallas_src>

<mosaic_0001>
module attributes {stable_mosaic.version = 11 : i64} {
  func.func @fused_encoder_kernel(%arg0: i32, %arg1: memref<8x128xf32, #tpu.memory_space<vmem>>, %arg2: memref<128x128xf32, #tpu.memory_space<vmem>>, %arg3: memref<1x128xf32, #tpu.memory_space<vmem>>, %arg4: memref<1x128xf32, #tpu.memory_space<vmem>>, %arg5: memref<128x128xf32, #tpu.memory_space<vmem>>, %arg6: memref<1x128xf32, #tpu.memory_space<vmem>>, %arg7: memref<8x128xf32, #tpu.memory_space<vmem>>) attributes {dimension_semantics = [#tpu.dimension_semantics<arbitrary>], iteration_bounds = array<i64: 1>, scalar_prefetch = 0 : i64, scratch_operands = 0 : i64, tpu.core_type = #tpu.core_type<tc>, window_params = [{pipeline_mode = #tpu.pipeline_mode<synchronous>, transform_indices = @transform_0, window_bounds = array<i64: 8, 128>}, {pipeline_mode = #tpu.pipeline_mode<synchronous>, transform_indices = @transform_1, window_bounds = array<i64: 128, 128>}, {pipeline_mode = #tpu.pipeline_mode<synchronous>, transform_indices = @transform_2, window_bounds = array<i64: 1, 128>}, {pipeline_mode = #tpu.pipeline_mode<synchronous>, transform_indices = @transform_3, window_bounds = array<i64: 1, 128>}, {pipeline_mode = #tpu.pipeline_mode<synchronous>, transform_indices = @transform_4, window_bounds = array<i64: 128, 128>}, {pipeline_mode = #tpu.pipeline_mode<synchronous>, transform_indices = @transform_5, window_bounds = array<i64: 1, 128>}, {pipeline_mode = #tpu.pipeline_mode<synchronous>, transform_indices = @transform_6, window_bounds = array<i64: 8, 128>}]} {
    %c0 = arith.constant 0 : index
    %c0_0 = arith.constant 0 : index
    %0 = vector.load %arg1[%c0, %c0_0] : memref<8x128xf32, #tpu.memory_space<vmem>>, vector<8x128xf32>
    %c0_1 = arith.constant 0 : index
    %c0_2 = arith.constant 0 : index
    %1 = vector.load %arg2[%c0_1, %c0_2] : memref<128x128xf32, #tpu.memory_space<vmem>>, vector<128x128xf32>
    %cst = arith.constant dense<0.000000e+00> : vector<8x128xf32>
    %2 = tpu.matmul %0, %1, %cst {dimension_numbers = #tpu.dot_dimension_numbers<[1], [0], [0], [1], [0, 0, 1, 1], [], []>} : vector<8x128xf32>, vector<128x128xf32>, vector<8x128xf32> -> vector<8x128xf32>
    %cst_3 = arith.constant dense<0.000000e+00> : vector<128xf32>
    %3 = vector.multi_reduction <add>, %2, %cst_3 [0] : vector<8x128xf32> to vector<128xf32>
    %4 = vector.shape_cast %3 : vector<128xf32> to vector<1x128xf32>
    %cst_4 = arith.constant 1.250000e-01 : f32
    %5 = vector.broadcast %cst_4 : f32 to vector<1x128xf32>
    %6 = arith.mulf %4, %5 : vector<1x128xf32>
    %7 = arith.mulf %2, %2 : vector<8x128xf32>
    %cst_5 = arith.constant dense<0.000000e+00> : vector<128xf32>
    %8 = vector.multi_reduction <add>, %7, %cst_5 [0] : vector<8x128xf32> to vector<128xf32>
    %9 = vector.shape_cast %8 : vector<128xf32> to vector<1x128xf32>
    %cst_6 = arith.constant 1.250000e-01 : f32
    %10 = vector.broadcast %cst_6 : f32 to vector<1x128xf32>
    %11 = arith.mulf %9, %10 : vector<1x128xf32>
    %12 = arith.mulf %6, %6 : vector<1x128xf32>
    %13 = arith.subf %11, %12 : vector<1x128xf32>
    %cst_7 = arith.constant 0.000000e+00 : f32
    %14 = vector.broadcast %cst_7 : f32 to vector<1x128xf32>
    %15 = arith.maximumf %13, %14 : vector<1x128xf32>
    %c0_8 = arith.constant 0 : index
    %c0_9 = arith.constant 0 : index
    %16 = vector.load %arg3[%c0_8, %c0_9] : memref<1x128xf32, #tpu.memory_space<vmem>>, vector<1x128xf32>
    %cst_10 = arith.constant 9.99999974E-6 : f32
    %17 = vector.broadcast %cst_10 : f32 to vector<1x128xf32>
    %18 = arith.addf %15, %17 : vector<1x128xf32>
    %19 = math.rsqrt %18 : vector<1x128xf32>
    %20 = arith.mulf %16, %19 : vector<1x128xf32>
    %c0_11 = arith.constant 0 : index
    %c0_12 = arith.constant 0 : index
    %21 = vector.load %arg4[%c0_11, %c0_12] : memref<1x128xf32, #tpu.memory_space<vmem>>, vector<1x128xf32>
    %22 = arith.mulf %6, %20 : vector<1x128xf32>
    %23 = arith.subf %21, %22 : vector<1x128xf32>
    %24 = vector.broadcast %20 : vector<1x128xf32> to vector<8x128xf32>
    %25 = arith.mulf %2, %24 : vector<8x128xf32>
    %26 = vector.broadcast %23 : vector<1x128xf32> to vector<8x128xf32>
    %27 = arith.addf %25, %26 : vector<8x128xf32>
    %cst_13 = arith.constant 0.000000e+00 : f32
    %28 = vector.broadcast %cst_13 : f32 to vector<8x128xf32>
    %29 = arith.maximumf %27, %28 : vector<8x128xf32>
    %c0_14 = arith.constant 0 : index
    %c0_15 = arith.constant 0 : index
    %30 = vector.load %arg5[%c0_14, %c0_15] : memref<128x128xf32, #tpu.memory_space<vmem>>, vector<128x128xf32>
    %cst_16 = arith.constant dense<0.000000e+00> : vector<8x128xf32>
    %31 = tpu.matmul %29, %30, %cst_16 {dimension_numbers = #tpu.dot_dimension_numbers<[1], [0], [0], [1], [0, 0, 1, 1], [], []>} : vector<8x128xf32>, vector<128x128xf32>, vector<8x128xf32> -> vector<8x128xf32>
    %c0_17 = arith.constant 0 : index
    %c0_18 = arith.constant 0 : index
    %32 = vector.load %arg6[%c0_17, %c0_18] : memref<1x128xf32, #tpu.memory_space<vmem>>, vector<1x128xf32>
    %33 = vector.broadcast %32 : vector<1x128xf32> to vector<8x128xf32>
    %34 = arith.addf %31, %33 : vector<8x128xf32>
    %35 = arith.negf %34 : vector<8x128xf32>
    %36 = math.exp %35 : vector<8x128xf32>
    %cst_19 = arith.constant 1.000000e+00 : f32
    %37 = vector.broadcast %cst_19 : f32 to vector<8x128xf32>
    %38 = arith.addf %37, %36 : vector<8x128xf32>
    %39 = arith.divf %37, %38 : vector<8x128xf32>
    %c0_20 = arith.constant 0 : index
    %c0_21 = arith.constant 0 : index
    %40 = vector.load %arg7[%c0_20, %c0_21] : memref<8x128xf32, #tpu.memory_space<vmem>>, vector<8x128xf32>
    tpu.vector_store %arg7[%c0_20, %c0_21], %39 {strides = array<i32>} : memref<8x128xf32, #tpu.memory_space<vmem>>, vector<8x128xf32>,
    return
  }
  func.func @transform_0(%arg0: i32) -> (i32, i32) {
    %c0_i32 = arith.constant 0 : i32
    %c0_i32_0 = arith.constant 0 : i32
    %c0_i32_1 = arith.constant 0 : i32
    return %c0_i32, %c0_i32_0 : i32, i32
  }
  func.func @transform_1(%arg0: i32) -> (i32, i32) {
    %c0_i32 = arith.constant 0 : i32
    %c0_i32_0 = arith.constant 0 : i32
    %c0_i32_1 = arith.constant 0 : i32
    return %c0_i32, %c0_i32_0 : i32, i32
  }
  func.func @transform_2(%arg0: i32) -> (i32, i32) {
    %c0_i32 = arith.constant 0 : i32
    %c0_i32_0 = arith.constant 0 : i32
    %c0_i32_1 = arith.constant 0 : i32
    return %c0_i32, %c0_i32_0 : i32, i32
  }
  func.func @transform_3(%arg0: i32) -> (i32, i32) {
    %c0_i32 = arith.constant 0 : i32
    %c0_i32_0 = arith.constant 0 : i32
    %c0_i32_1 = arith.constant 0 : i32
    return %c0_i32, %c0_i32_0 : i32, i32
  }
  func.func @transform_4(%arg0: i32) -> (i32, i32) {
    %c0_i32 = arith.constant 0 : i32
    %c0_i32_0 = arith.constant 0 : i32
    %c0_i32_1 = arith.constant 0 : i32
    return %c0_i32, %c0_i32_0 : i32, i32
  }
  func.func @transform_5(%arg0: i32) -> (i32, i32) {
    %c0_i32 = arith.constant 0 : i32
    %c0_i32_0 = arith.constant 0 : i32
    %c0_i32_1 = arith.constant 0 : i32
    return %c0_i32, %c0_i32_0 : i32, i32
  }
  func.func @transform_6(%arg0: i32) -> (i32, i32) {
    %c0_i32 = arith.constant 0 : i32
    %c0_i32_0 = arith.constant 0 : i32
    %c0_i32_1 = arith.constant 0 : i32
    return %c0_i32, %c0_i32_0 : i32, i32
  }
}

</mosaic_0001>

<bundles_post_ra>
// kernel: tpu_custom_call.1
= control target key start
LH: loop header
LB: loop body
LE: loop exit
PB: predicated region body
PF: predicated region fallthrough
CT: control target
= control target key end

     0   :  { %11 = vsyncpa [#allocation3], 0  ;;  %s692_s0 = inlined_call_operand.hbm [shape: f32[8,128], index: 0, kind: input, shape index: {}]   ;;  %s693_s1 = inlined_call_operand.hbm [shape: f32[128,128], index: 1, kind: input, shape index: {}]   ;;  %s694_s2 = inlined_call_operand.vmem [shape: f32[1,128], index: 2, kind: input, shape index: {}]   ;;  %s695_s3 = inlined_call_operand.vmem [shape: f32[1,128], index: 3, kind: input, shape index: {}]   ;;  %s696_s4 = inlined_call_operand.hbm [shape: f32[128,128], index: 4, kind: input, shape index: {}]   ;;  %s697_s5 = inlined_call_operand.vmem [shape: f32[1,128], index: 5, kind: input, shape index: {}]   ;;  %s698_s6 = inlined_call_operand.hbm [shape: f32[8,128], index: 6, kind: output, shape index: {}]  }
   0x1   :  { %12 = vsyncpa [#allocation6], 0 }
   0x2   :  { %13 = vsyncpa [#allocation4], 0  ;;  %s569_s21 = smov [#allocation5]   ;;  %s475_s25 = scalar_lea.hbm %s693_s1, 2048 }
   0x3   :  { %s29_s22 = sshll.u32 %s569_s21, 4  ;;  %p476_p0 = scmp.ne.s32.totalorder %s693_s1, %s475_s25  ;;  %s30_s22 = int_to_ptr.vmem [resolvable:$true] %s29_s22 }
   0x4   :  { %p479_p1 = scmp.lt.u32.totalorder %s475_s25, %s693_s1 }
   0x6   :  { %p481_p2 = pnand %p479_p1, %p476_p0 }
   0x8   :  { %484 = shalt.err (!%p481_p2)
}
   0x9   :  { %s485_s30 = scalar_lea.vmem %s30_s22, 2048  ;;  %p490_p4 = scmp.lt.s32.totalorder %s30_s22, %s30_s22 }
   0xa   :  { %p486_p3 = scmp.ne.s32.totalorder %s30_s22, %s485_s30  ;;  %p491_p5 = scmp.lt.s32.totalorder %s485_s30, %s485_s30 }
   0xc   :  { %p492_p6 = por %p491_p5, %p490_p4 }
   0xe   :  { %p493_p7 = pnand %p492_p6, %p486_p3 }
  0x10   :  { %496 = shalt.err (!%p493_p7)
}
  0x11   :  { %s570_s7 = smov 128   ;;  %s571_s8 = smov 8  }
  0x12   :  { %35 = dma.hbm_to_vmem [thread:$0]  %s693_s1, 2048, %s30_s22, [#allocation6], %s570_s7, %s570_s7, %s571_s8  }
  0x13   :  { %s572_s11 = smov [#allocation2]   ;;  %s573_s13 = smov [#allocation7]  }
  0x14   :  { %s20_s12 = sshll.u32 %s572_s11, 4  ;;  %s45_s14 = sshll.u32 %s573_s13, 4  ;;  %s21_s12 = int_to_ptr.vmem [resolvable:$true] %s20_s12  ;;  %s46_s14 = int_to_ptr.vmem [resolvable:$true] %s45_s14 }
  0x15   :  { %s497_s17 = scalar_lea.hbm %s692_s0, 128 }
  0x16   :  { %p498_p8 = scmp.ne.s32.totalorder %s692_s0, %s497_s17  ;;  %p501_p9 = scmp.lt.u32.totalorder %s497_s17, %s692_s0 }
  0x18   :  { %p503_p10 = pnand %p501_p9, %p498_p8 }
  0x1a   :  { %506 = shalt.err (!%p503_p10)
}
  0x1b   :  { %s507_s1 = scalar_lea.vmem %s21_s12, 128  ;;  %p512_p12 = scmp.lt.s32.totalorder %s21_s12, %s21_s12 }
  0x1c   :  { %p508_p11 = scmp.ne.s32.totalorder %s21_s12, %s507_s1  ;;  %p513_p13 = scmp.lt.s32.totalorder %s507_s1, %s507_s1 }
  0x1e   :  { %p514_p0 = por %p513_p13, %p512_p12 }
  0x20   :  { %p515_p1 = pnand %p514_p0, %p508_p11 }
  0x22   :  { %518 = shalt.err (!%p515_p1)
}
  0x23   :  { %23 = dma.hbm_to_vmem [thread:$0]  %s692_s0, 128, %s21_s12, [#allocation3]  }
  0x24   :  { %s519_s26 = scalar_lea.hbm %s696_s4, 2048 }
  0x25   :  { %p520_p2 = scmp.ne.s32.totalorder %s696_s4, %s519_s26  ;;  %p523_p3 = scmp.lt.u32.totalorder %s519_s26, %s696_s4 }
  0x27   :  { %p525_p4 = pnand %p523_p3, %p520_p2 }
  0x29   :  { %528 = shalt.err (!%p525_p4)
}
  0x2a   :  { %s529_s9 = scalar_lea.vmem %s46_s14, 2048  ;;  %p534_p6 = scmp.lt.s32.totalorder %s46_s14, %s46_s14 }
  0x2b   :  { %p530_p5 = scmp.ne.s32.totalorder %s46_s14, %s529_s9  ;;  %p535_p7 = scmp.lt.s32.totalorder %s529_s9, %s529_s9 }
  0x2d   :  { %p536_p8 = por %p535_p7, %p534_p6 }
  0x2f   :  { %p537_p9 = pnand %p536_p8, %p530_p5 }
  0x31   :  { %540 = shalt.err (!%p537_p9)
}
  0x32   :  { %51 = dma.hbm_to_vmem [thread:$0]  %s696_s4, 2048, %s46_s14, [#allocation6], %s570_s7, %s570_s7, %s571_s8  }
  0x33   :  { %563 = dma.done.wait [#allocation3], 128  }
  0x34   :  { %564 = vsyncadd [#allocation3], 4294967168 }
  0x35   :  { %565 = dma.done.wait [#allocation6], 4096  }
  0x36   :  { %566 = vsyncadd [#allocation6], 4294963200  ;;  %v574_v0 = vmov 0.0|0.0   ;;  %vm575_vm0 = vmmov 0   ;;  %v576_v1 = vmov 0.0   ;;  %v64_v2 = vld [vmem:[#allocation5] sm:$0xff] }
  0x37   :  { %412 = vmatprep.subr.bf16.mxu0 %v574_v0  ;;  %374 = vmatprep.mubr.msk.f32.mxu0 %vm575_vm0, %v576_v1  ;;  %v65_v3 = vld [vmem:[#allocation5 + $0x8] sm:$0xff]  ;;  %v66_v4 = vld [vmem:[#allocation5 + $0x10] sm:$0xff]  ;;  %v67_v6 = vld [vmem:[#allocation5 + $0x18] sm:$0xff] }
  0x38   :  { %436 = vmatprep.subr.bf16.mxu1 %v574_v0  ;;  %409 = vmatprep.mubr.msk.f32.mxu1 %vm575_vm0, %v576_v1  ;;  %v413_v5 = vpack.c.bf16 %v65_v3, %v64_v2  ;;  %v416_v7 = vpack.c.bf16 %v67_v6, %v66_v4  ;;  %v68_v8 = vld [vmem:[#allocation5 + $0x20] sm:$0xff]  ;;  %v69_v9 = vld [vmem:[#allocation5 + $0x28] sm:$0xff]  ;;  %v70_v11 = vld [vmem:[#allocation5 + $0x30] sm:$0xff] }
  0x39   :  { %v419_v10 = vpack.c.bf16 %v69_v9, %v68_v8  ;;  %v71_v12 = vld [vmem:[#allocation5 + $0x38] sm:$0xff]  ;;  %v72_v14 = vld [vmem:[#allocation5 + $0x40] sm:$0xff]  ;;  %v73_v15 = vld [vmem:[#allocation5 + $0x48] sm:$0xff]  ;;  %v176_v8 = vlaneseq }
  0x3a   :  { %414 = vmatpush3.bf16.msra.mxu0 %v413_v5  ;;  %v422_v13 = vpack.c.bf16 %v71_v12, %v70_v11  ;;  %v425_v16 = vpack.c.bf16 %v73_v15, %v72_v14  ;;  %v74_v17 = vld [vmem:[#allocation5 + $0x50] sm:$0xff]  ;;  %v75_v18 = vld [vmem:[#allocation5 + $0x58] sm:$0xff]  ;;  %v76_v20 = vld [vmem:[#allocation5 + $0x60] sm:$0xff] }
  0x3b   :  { %415 = vmatprep.subr.bf16.mxu0 %v574_v0  ;;  %v428_v19 = vpack.c.bf16 %v75_v18, %v74_v17  ;;  %v77_v21 = vld [vmem:[#allocation5 + $0x68] sm:$0xff]  ;;  %v78_v23 = vld [vmem:[#allocation5 + $0x70] sm:$0xff]  ;;  %v79_v24 = vld [vmem:[#allocation5 + $0x78] sm:$0xff]  ;;  %v177_v9 = vshrl.u32 %v176_v8, 7 }
  0x3c   :  { %v431_v22 = vpack.c.bf16 %v77_v21, %v76_v20  ;;  %v434_v25 = vpack.c.bf16 %v79_v24, %v78_v23  ;;  %v63_v26 = vld [vmem:[#allocation2] sm:$0xff]  ;;  %v190_v27 = vld [vmem:[#allocation7] sm:$0xff]  ;;  %v191_v28 = vld [vmem:[#allocation7 + $0x8] sm:$0xff] }
  0x3d   :  { %v437_v29 = vpack.c.bf16 %v191_v28, %v190_v27  ;;  %v192_v30 = vld [vmem:[#allocation7 + $0x10] sm:$0xff]  ;;  %v193_v31 = vld [vmem:[#allocation7 + $0x18] sm:$0xff]  ;;  %v194_v33 = vld [vmem:[#allocation7 + $0x20] sm:$0xff]  ;;  %v178_v11 = vsub.s32 0, %v177_v9 }
  0x3e   :  { %417 = vmatpush3.bf16.msra.mxu0 %v416_v7  ;;  %v440_v32 = vpack.c.bf16 %v193_v31, %v192_v30  ;;  %v195_v34 = vld [vmem:[#allocation7 + $0x28] sm:$0xff]  ;;  %v196_v36 = vld [vmem:[#allocation7 + $0x30] sm:$0xff]  ;;  %v197_v37 = vld [vmem:[#allocation7 + $0x38] sm:$0xff] }
  0x3f   :  { %418 = vmatprep.subr.bf16.mxu0 %v574_v0  ;;  %438 = vmatpush3.bf16.msra.mxu1 %v437_v29  ;;  %v443_v35 = vpack.c.bf16 %v195_v34, %v194_v33  ;;  %v446_v38 = vpack.c.bf16 %v197_v37, %v196_v36  ;;  %v198_v39 = vld [vmem:[#allocation7 + $0x40] sm:$0xff]  ;;  %v199_v40 = vld [vmem:[#allocation7 + $0x48] sm:$0xff]  ;;  %v200_v42 = vld [vmem:[#allocation7 + $0x50] sm:$0xff] }
  0x40   :  { %439 = vmatprep.subr.bf16.mxu1 %v574_v0  ;;  %v449_v41 = vpack.c.bf16 %v199_v40, %v198_v39  ;;  %v201_v43 = vld [vmem:[#allocation7 + $0x58] sm:$0xff]  ;;  %v202_v45 = vld [vmem:[#allocation7 + $0x60] sm:$0xff]  ;;  %v203_v46 = vld [vmem:[#allocation7 + $0x68] sm:$0xff] }
  0x41   :  { %v452_v44 = vpack.c.bf16 %v201_v43, %v200_v42  ;;  %v455_v47 = vpack.c.bf16 %v203_v46, %v202_v45  ;;  %v204_v48 = vld [vmem:[#allocation7 + $0x70] sm:$0xff]  ;;  %v205_v49 = vld [vmem:[#allocation7 + $0x78] sm:$0xff] }
  0x42   :  { %420 = vmatpush3.bf16.msra.mxu0 %v419_v10  ;;  %v458_v50 = vpack.c.bf16 %v205_v49, %v204_v48  ;;  %v168_v10 = vld [vmem:[%s694_s2] sm:$0x1]  ;;  %s577_s2 = smov [#allocation8]  }
  0x43   :  { %421 = vmatprep.subr.bf16.mxu0 %v574_v0  ;;  %441 = vmatpush3.bf16.msra.mxu1 %v440_v32  ;;  %v172_v14 = vld [vmem:[%s695_s3] sm:$0x1]  ;;  %s296_s3 = sshll.u32 %s577_s2, 4  ;;  %s297_s3 = int_to_ptr.vmem [resolvable:$true] %s296_s3 }
  0x44   :  { %442 = vmatprep.subr.bf16.mxu1 %v574_v0  ;;  %s541_s14 = scalar_lea.vmem %s297_s3, 128  ;;  %p546_p11 = scmp.lt.s32.totalorder %s297_s3, %s297_s3 }
  0x45   :  { %p542_p10 = scmp.ne.s32.totalorder %s297_s3, %s541_s14  ;;  %p547_p12 = scmp.lt.s32.totalorder %s541_s14, %s541_s14 }
  0x46   :  { %423 = vmatpush3.bf16.msra.mxu0 %v422_v13 }
  0x47   :  { %424 = vmatprep.subr.bf16.mxu0 %v574_v0  ;;  %444 = vmatpush3.bf16.msra.mxu1 %v443_v35  ;;  %p548_p13 = por %p547_p12, %p546_p11 }
  0x48   :  { %445 = vmatprep.subr.bf16.mxu1 %v574_v0 }
  0x49   :  { %p549_p0 = pnand %p548_p13, %p542_p10 }
  0x4a   :  { %426 = vmatpush3.bf16.msra.mxu0 %v425_v16 }
  0x4b   :  { %427 = vmatprep.subr.bf16.mxu0 %v574_v0  ;;  %447 = vmatpush3.bf16.msra.mxu1 %v446_v38 }
  0x4c   :  { %448 = vmatprep.subr.bf16.mxu1 %v574_v0 }
  0x4e   :  { %429 = vmatpush3.bf16.msra.mxu0 %v428_v19 }
  0x4f   :  { %430 = vmatprep.subr.bf16.mxu0 %v574_v0  ;;  %450 = vmatpush3.bf16.msra.mxu1 %v449_v41 }
  0x50   :  { %451 = vmatprep.subr.bf16.mxu1 %v574_v0 }
  0x52   :  { %432 = vmatpush3.bf16.msra.mxu0 %v431_v22  ;;  %v306_v22 = vld [vmem:[%s697_s5] ss:$0 sm:$0xff] }
  0x53   :  { %433 = vmatprep.subr.bf16.mxu0 %v574_v0  ;;  %453 = vmatpush3.bf16.msra.mxu1 %v452_v44 }
  0x54   :  { %454 = vmatprep.subr.bf16.mxu1 %v574_v0 }
  0x56   :  { %435 = vmatpush3.bf16.msra.mxu0 %v434_v25 }
  0x57   :  { %456 = vmatpush3.bf16.msra.mxu1 %v455_v47 }
  0x58   :  { %457 = vmatprep.subr.bf16.mxu1 %v574_v0 }
  0x59   :  { %375 = vmatmul.mubr.f32.vlgmr.msra.gmra.mrb[0].mxu0 %v63_v26 }
  0x5b   :  { %459 = vmatpush3.bf16.msra.mxu1 %v458_v50 }
 0x12c   :  { %v146_v51 = vpop.f32.mrb[0].mxu0 }
 0x12d   :  { %v150_v52 = vrot.slane %v146_v51, 4  ;;  %v157_v53 = vmul.f32 %v146_v51, %v146_v51  ;;  %v376_v54 = vpop.f32.mrb[1].mxu0 }
 0x12f   :  { %v151_v55 = vadd.f32 %v150_v52, %v146_v51  ;;  %v158_v56 = vrot.slane %v157_v53, 4 }
 0x131   :  { %v152_v57 = vrot.slane %v151_v55, 2  ;;  %v159_v58 = vadd.f32 %v158_v56, %v157_v53 }
 0x133   :  { %v153_v59 = vadd.f32 %v152_v57, %v151_v55  ;;  %v160_v60 = vrot.slane %v159_v58, 2 }
 0x135   :  { %v154_v61 = vrot.slane %v153_v59, 1  ;;  %v161_v62 = vadd.f32 %v160_v60, %v159_v58 }
 0x137   :  { %v155_v63 = vadd.f32 %v154_v61, %v153_v59  ;;  %v162_v1 = vrot.slane %v161_v62, 1 }
 0x139   :  { %v156_v2 = vmul.f32 0.125, %v155_v63  ;;  %v163_v3 = vadd.f32 %v162_v1, %v161_v62 }
 0x13b   :  { %v164_v4 = vmul.f32 0.125, %v163_v3  ;;  %v165_v5 = vmul.f32 %v156_v2, %v156_v2 }
 0x13d   :  { %v166_v0 = vsub.f32 %v164_v4, %v165_v5 }
 0x13f   :  { %v167_v6 = vmax.f32 %v166_v0, 0.0 }
 0x141   :  { %v169_v7 = vadd.f32 1e-05, %v167_v6 }
 0x143   :  { %469 = vrsqrt.f32 %v169_v7 }
 0x14d   :  { %v470_v12 = vpop.eup %469 }
 0x14e   :  { %v171_v13 = vmul.f32 %v470_v12, %v168_v10 }
 0x150   :  { %v179_v15 = vrot.slane %v171_v13, %v178_v11  ;;  %v173_v16 = vmul.f32 %v171_v13, %v156_v2 }
 0x152   :  { %v174_v17 = vsub.f32 %v172_v14, %v173_v16  ;;  %v181_v18 = vmul.f32 %v179_v15, %v146_v51 }
 0x154   :  { %v186_v19 = vrot.slane %v174_v17, %v178_v11 }
 0x156   :  { %v188_v20 = vadd.f32 %v186_v19, %v181_v18 }
 0x158   :  { %v189_v21 = vmax.f32 %v188_v20, 0.0 }
 0x15a   :  { %410 = vmatmul.mubr.f32.vlgmr.msra.gmra.mrb[0].mxu1 %v189_v21 }
 0x22d   :  { %v279_v23 = vpop.f32.mrb[0].mxu1 }
 0x22e   :  { %v280_v24 = vadd.f32 %v306_v22, %v279_v23  ;;  %v411_v25 = vpop.f32.mrb[1].mxu1 }
 0x230   :  { %v307_v26 = vmul.f32 -1.442695, %v280_v24 }
 0x232   :  { %471 = vpow2.f32 %v307_v26 }
 0x23c   :  { %v472_v27 = vpop.eup %471 }
 0x23d   :  { %v286_v28 = vadd.f32 1.0, %v472_v27 }
 0x23f   :  { %473 = vrcp.f32 %v286_v28 }
 0x249   :  { %v474_v29 = vpop.eup %473 }
 0x24a   :  { %289 = vst [vmem:[#allocation8] sm:$0xff] %v474_v29 }
 0x24b   :  { %552 = shalt.err (!%p549_p0)
}
 0x24c   :  { %s553_s16 = scalar_lea.hbm %s698_s6, 128 }
 0x24d   :  { %p554_p1 = scmp.ne.s32.totalorder %s698_s6, %s553_s16  ;;  %p557_p2 = scmp.lt.u32.totalorder %s553_s16, %s698_s6 }
 0x24f   :  { %p559_p3 = pnand %p557_p2, %p554_p1 }
 0x251   :  { %562 = shalt.err (!%p559_p3)
}
 0x252   :  { %299 = dma.vmem_to_hbm [thread:$0]  %s297_s3, 128, %s698_s6, [#allocation4]  }
 0x253   :  { %567 = dma.done.wait [#allocation4], 128  }
 0x254   :  { %568 = vsyncadd [#allocation4], 4294967168 }
 0x255   :  { %303 = vsyncpa [#allocation3], 1 }
 0x256   :  { %304 = vsyncpa [#allocation6], 1 }
 0x257   :  { %305 = vsyncpa [#allocation4], 1 }

</bundles_post_ra>
